<compile_context>
chip_gen: v6e
topology: v6e:2x2x1
jax: 0.10.0
libtpu: 0.0.40
codegen_flags: <defaults>
</compile_context>

<pallas_src>
import math

import jax
import jax.numpy as jnp
from jax.experimental import pallas as pl
from jax.experimental.pallas import tpu as pltpu

# ------------------------- model configuration (small) -----------------------
INPUT_DIM = 16
N_SOURCE = 4
HIDDEN_DIM = 32
N_LAYERS = 2          # kernel below is specialized for n_layers == 2
LATENT_DIM = 8
BATCH = 8

EPS_DIM = INPUT_DIM + N_SOURCE + LATENT_DIM          # 28 (eps_x | eps_src | eps_z)
OUT_DIM = INPUT_DIM + LATENT_DIM                     # 24 (x_hat | z)


def _ceil8(n: int) -> int:
    return (n + 7) // 8 * 8


def _cdiv(a: int, b: int) -> int:
    return -(-a // b)


# ---------------------- packed input-row layout (B, 48) ----------------------
X_LO, X_HI = 0, INPUT_DIM                              # 0:16   raw x
SRC_LO, SRC_HI = X_HI, X_HI + N_SOURCE                 # 16:20  one-hot(src)
EX_LO, EX_HI = SRC_HI, SRC_HI + INPUT_DIM              # 20:36  eps_x
ES_LO, ES_HI = EX_HI, EX_HI + N_SOURCE                 # 36:40  eps_src
EZ_LO, EZ_HI = ES_HI, ES_HI + LATENT_DIM               # 40:48  eps_z
ROW_DIM = EZ_HI                                        # 48


# ------------- row-packed vector / bias slab: (17, 32), lane-0 ---------------
_VB_ENTRIES = [
    ("mu_x", INPUT_DIM), ("std_x", INPUT_DIM), ("exp_scale_x", INPUT_DIM),
    ("mu_z", LATENT_DIM), ("std_z", LATENT_DIM), ("exp_scale_z", LATENT_DIM),
    ("exp_scale_src", N_SOURCE), ("exp_scale_out", INPUT_DIM),
    ("b_src_ml", 2 * N_SOURCE), ("b_res_src", N_SOURCE), ("b_res_z", LATENT_DIM),
    ("b_enc0", HIDDEN_DIM), ("b_enc1", HIDDEN_DIM), ("b_enc2", LATENT_DIM),
    ("b_dec0", HIDDEN_DIM), ("b_dec1", HIDDEN_DIM), ("b_dec2", INPUT_DIM),
]
_VB_ROW = {name: (i, width) for i, (name, width) in enumerate(_VB_ENTRIES)}
VB_ROWS = len(_VB_ENTRIES)                             # 17
VB_COLS = HIDDEN_DIM                                   # 32


# ------- single weight slab: (184, 64), each block 8-row / lane-0 aligned ----
_W_ENTRIES = [
    ("enc0_x", INPUT_DIM, HIDDEN_DIM),                 # x part of encoder L0
    ("enc1", HIDDEN_DIM, HIDDEN_DIM),
    ("dec0_z", LATENT_DIM, HIDDEN_DIM),                # z part of decoder L0
    ("dec1", HIDDEN_DIM, HIDDEN_DIM),
    ("enc2", HIDDEN_DIM, LATENT_DIM),
    ("dec2", HIDDEN_DIM, INPUT_DIM),
    ("src_ml", N_SOURCE, 2 * N_SOURCE),                # [mu_src_w | logvar_src_w]
    ("res_src", N_SOURCE, N_SOURCE),
    ("res_z", LATENT_DIM, LATENT_DIM),
    ("src_hid", N_SOURCE, 2 * HIDDEN_DIM),             # [enc0_src_w | dec0_src_w]
]
_W_OFF = {}
_row = 0
for _name, _rows, _cols in _W_ENTRIES:
    _W_OFF[_name] = (_row, _rows, _cols)
    _row = _ceil8(_row + _rows)
W_ROWS = _row                                          # 184
W_COLS = 2 * HIDDEN_DIM                                # 64


# --------------------------------- kernel ------------------------------------
def mesnet_kernel(row_ref, vb_ref, w_ref, out_ref):
    f32 = jnp.float32

    def vb(name):                       # (1, w) row, lane-0 aligned
        r, w = _VB_ROW[name]
        return vb_ref[r:r + 1, 0:w]

    def wgt(name):                      # (rows, cols) block, 8-row / lane-0 aligned
        r0, rows, cols = _W_OFF[name]
        return w_ref[r0:r0 + rows, 0:cols]

    row = row_ref[...]                                  # (tb, 48) single load
    x = row[:, X_LO:X_HI]
    src = row[:, SRC_LO:SRC_HI]                         # one-hot, built in wrapper
    eps_x = row[:, EX_LO:EX_HI]
    eps_src = row[:, ES_LO:ES_HI]
    eps_z = row[:, EZ_LO:EZ_HI]

    # --- x branch (std / exp(scale) pre-folded into the slab) -----------------
    x = x + vb("mu_x") + vb("std_x") * eps_x
    x = x * vb("exp_scale_x")

    # --- src branch: mu_src & logvar_src fused into one (4, 8) matmul ---------
    ml = jnp.dot(src, wgt("src_ml"), preferred_element_type=f32) + vb("b_src_ml")
    std_s = jnp.exp(0.5 * ml[:, N_SOURCE:2 * N_SOURCE])
    src = src + ml[:, 0:N_SOURCE] + std_s * eps_src
    src = (src + jnp.dot(src, wgt("res_src"), preferred_element_type=f32)
           + vb("b_res_src"))
    src = src * vb("exp_scale_src")

    # finalized src feeds both first layers through ONE fused (4, 64) matmul
    src_hid = jnp.dot(src, wgt("src_hid"), preferred_element_type=f32)

    # --- encoder (concat replaced by split matmuls) ----------------------------
    h = jnp.maximum(jnp.dot(x, wgt("enc0_x"), preferred_element_type=f32)
                    + src_hid[:, 0:HIDDEN_DIM] + vb("b_enc0"), 0.0)
    h = jnp.dot(h, wgt("enc1"), preferred_element_type=f32) + vb("b_enc1")
    z = jnp.dot(h, wgt("enc2"), preferred_element_type=f32) + vb("b_enc2")

    # --- latent branch ----------------------------------------------------------
    z = z + vb("mu_z") + vb("std_z") * eps_z
    z = (z + jnp.dot(z, wgt("res_z"), preferred_element_type=f32)
         + vb("b_res_z"))
    z = z * vb("exp_scale_z")
    z_norm = jnp.sqrt(jnp.sum(z * z, axis=-1, keepdims=True))
    z = z * (jnp.log1p(z_norm) / (z_norm + 1e-9))       # exact divide

    # --- decoder -----------------------------------------------------------------
    h = jnp.maximum(jnp.dot(z, wgt("dec0_z"), preferred_element_type=f32)
                    + src_hid[:, HIDDEN_DIM:2 * HIDDEN_DIM] + vb("b_dec0"), 0.0)
    h = jnp.dot(h, wgt("dec1"), preferred_element_type=f32) + vb("b_dec1")
    x_hat = jnp.dot(h, wgt("dec2"), preferred_element_type=f32) + vb("b_dec2")
    x_hat = x_hat * vb("exp_scale_out")

    # lane-packed output block: [x_hat | z]
    out_ref[:, 0:INPUT_DIM] = x_hat
    out_ref[:, INPUT_DIM:OUT_DIM] = z


# ------------------------------ parameter init --------------------------------
def init_raw_params(key):
    ks = jax.random.split(key, 10)

    def kaiming(k, din, dout):
        # nn.init.kaiming_uniform_ defaults: gain=sqrt(2), bound=sqrt(6/fan_in)
        bound = math.sqrt(6.0 / din)
        return jax.random.uniform(k, (din, dout), jnp.float32, -bound, bound)

    zv = lambda d: jnp.zeros((d,), jnp.float32)
    return dict(
        enc_w0=kaiming(ks[0], INPUT_DIM + N_SOURCE, HIDDEN_DIM), enc_b0=zv(HIDDEN_DIM),
        enc_w1=kaiming(ks[1], HIDDEN_DIM, HIDDEN_DIM),           enc_b1=zv(HIDDEN_DIM),
        enc_w2=kaiming(ks[2], HIDDEN_DIM, LATENT_DIM),           enc_b2=zv(LATENT_DIM),
        dec_w0=kaiming(ks[3], LATENT_DIM + N_SOURCE, HIDDEN_DIM), dec_b0=zv(HIDDEN_DIM),
        dec_w1=kaiming(ks[4], HIDDEN_DIM, HIDDEN_DIM),           dec_b1=zv(HIDDEN_DIM),
        dec_w2=kaiming(ks[5], HIDDEN_DIM, INPUT_DIM),            dec_b2=zv(INPUT_DIM),
        mu_src_w=kaiming(ks[6], N_SOURCE, N_SOURCE),             mu_src_b=zv(N_SOURCE),
        logvar_src_w=kaiming(ks[7], N_SOURCE, N_SOURCE),         logvar_src_b=zv(N_SOURCE),
        res_src_w=kaiming(ks[8], N_SOURCE, N_SOURCE),            res_src_b=zv(N_SOURCE),
        res_z_w=kaiming(ks[9], LATENT_DIM, LATENT_DIM),          res_z_b=zv(LATENT_DIM),
        mu_x=zv(INPUT_DIM), logvar_x=zv(INPUT_DIM), scale_x=zv(INPUT_DIM),
        mu_z=zv(LATENT_DIM), logvar_z=zv(LATENT_DIM), scale_z=zv(LATENT_DIM),
        scale_src=zv(N_SOURCE), scale_out=zv(INPUT_DIM),
    )


def pack_params(p):
    """One-time packing of every parameter into two lane-0-aligned VMEM slabs."""
    vb = jnp.zeros((VB_ROWS, VB_COLS), jnp.float32)

    def put_v(slab, name, vec):
        r, w = _VB_ROW[name]
        return slab.at[r, 0:w].set(vec.astype(jnp.float32))

    vb = put_v(vb, "mu_x", p["mu_x"])
    vb = put_v(vb, "std_x", jnp.exp(0.5 * p["logvar_x"]))
    vb = put_v(vb, "exp_scale_x", jnp.exp(p["scale_x"]))
    vb = put_v(vb, "mu_z", p["mu_z"])
    vb = put_v(vb, "std_z", jnp.exp(0.5 * p["logvar_z"]))
    vb = put_v(vb, "exp_scale_z", jnp.exp(p["scale_z"]))
    vb = put_v(vb, "exp_scale_src", jnp.exp(p["scale_src"]))
    vb = put_v(vb, "exp_scale_out", jnp.exp(p["scale_out"]))
    vb = put_v(vb, "b_src_ml", jnp.concatenate([p["mu_src_b"], p["logvar_src_b"]]))
    vb = put_v(vb, "b_res_src", p["res_src_b"])
    vb = put_v(vb, "b_res_z", p["res_z_b"])
    vb = put_v(vb, "b_enc0", p["enc_b0"])
    vb = put_v(vb, "b_enc1", p["enc_b1"])
    vb = put_v(vb, "b_enc2", p["enc_b2"])
    vb = put_v(vb, "b_dec0", p["dec_b0"])
    vb = put_v(vb, "b_dec1", p["dec_b1"])
    vb = put_v(vb, "b_dec2", p["dec_b2"])

    w = jnp.zeros((W_ROWS, W_COLS), jnp.float32)

    def put_w(slab, name, mat):
        r0, rows, cols = _W_OFF[name]
        assert mat.shape == (rows, cols), (name, mat.shape)
        return slab.at[r0:r0 + rows, 0:cols].set(mat.astype(jnp.float32))

    w = put_w(w, "enc0_x", p["enc_w0"][:INPUT_DIM])
    w = put_w(w, "enc1", p["enc_w1"])
    w = put_w(w, "dec0_z", p["dec_w0"][:LATENT_DIM])
    w = put_w(w, "dec1", p["dec_w1"])
    w = put_w(w, "enc2", p["enc_w2"])
    w = put_w(w, "dec2", p["dec_w2"])
    w = put_w(w, "src_ml", jnp.concatenate([p["mu_src_w"], p["logvar_src_w"]], axis=1))
    w = put_w(w, "res_src", p["res_src_w"])
    w = put_w(w, "res_z", p["res_z_w"])
    w = put_w(w, "src_hid",
              jnp.concatenate([p["enc_w0"][INPUT_DIM:], p["dec_w0"][LATENT_DIM:]],
                              axis=1))
    return (vb, w)


# --------------------------- pure-JAX reference --------------------------------
def reference_forward(x, src_int, eps, p):
    eps_x = eps[:, :INPUT_DIM]
    eps_src = eps[:, INPUT_DIM:INPUT_DIM + N_SOURCE]
    eps_z = eps[:, INPUT_DIM + N_SOURCE:]

    x = x + p["mu_x"] + jnp.exp(0.5 * p["logvar_x"]) * eps_x
    x = x * jnp.exp(p["scale_x"])

    src = jax.nn.one_hot(src_int, N_SOURCE, dtype=jnp.float32)
    std = jnp.exp(0.5 * (src @ p["logvar_src_w"] + p["logvar_src_b"]))
    src = src + (src @ p["mu_src_w"] + p["mu_src_b"]) + std * eps_src
    src = src + (src @ p["res_src_w"] + p["res_src_b"])
    src = src * jnp.exp(p["scale_src"])

    x_cond = jnp.concatenate([x, src], axis=-1)
    h = jax.nn.relu(x_cond @ p["enc_w0"] + p["enc_b0"])
    h = h @ p["enc_w1"] + p["enc_b1"]
    z = h @ p["enc_w2"] + p["enc_b2"]

    z = z + p["mu_z"] + jnp.exp(0.5 * p["logvar_z"]) * eps_z
    z = z + (z @ p["res_z_w"] + p["res_z_b"])
    z = z * jnp.exp(p["scale_z"])
    z_norm = jnp.sqrt(jnp.sum(z * z, axis=-1, keepdims=True))
    z = z * (jnp.log1p(z_norm) / (z_norm + 1e-9))

    z_cond = jnp.concatenate([z, src], axis=-1)
    h = jax.nn.relu(z_cond @ p["dec_w0"] + p["dec_b0"])
    h = h @ p["dec_w1"] + p["dec_b1"]
    x_hat = (h @ p["dec_w2"] + p["dec_b2"]) * jnp.exp(p["scale_out"])
    return x_hat, z


# --------------------------------- wrapper ------------------------------------
@jax.jit
def mesnet_forward(x, src_int, eps, packed):
    vb_slab, w_slab = packed
    B = x.shape[0]

    # Single packed input slab [x | one_hot(src) | eps] -> one DMA per grid step.
    src_oh = jax.nn.one_hot(src_int, N_SOURCE, dtype=jnp.float32)
    rows = jnp.concatenate(
        [x.astype(jnp.float32), src_oh, eps.astype(jnp.float32)], axis=-1)  # (B, 48)

    # Batch tile: per-row residency ~288 B double-buffered -> go big.
    MAX_TB = 4096
    if B <= 1024:
        tb = _ceil8(B)                      # single step (overhead-dominated anyway)
    else:
        n_steps = max(2, _cdiv(B, MAX_TB))  # >= 2 steps so both v7x TCs get work
        tb = _ceil8(_cdiv(B, n_steps))
    grid = (_cdiv(B, tb),)
    # If B % tb != 0 the padded tail rows are garbage flowing through exp();
    # they are discarded on writeback, so results stay correct.

    flops_per_row = 2 * sum(r * c for _, r, c in _W_ENTRIES)
    cost = pl.CostEstimate(
        flops=flops_per_row * B,
        transcendentals=6 * B,              # 4x exp + log1p + sqrt per row
        bytes_accessed=4 * ((ROW_DIM + OUT_DIM) * B
                            + VB_ROWS * VB_COLS + W_ROWS * W_COLS),
    )

    out = pl.pallas_call(
        mesnet_kernel,
        out_shape=jax.ShapeDtypeStruct((B, OUT_DIM), jnp.float32),
        grid_spec=pltpu.PrefetchScalarGridSpec(
            num_scalar_prefetch=0,
            grid=grid,
            in_specs=[
                pl.BlockSpec((tb, ROW_DIM), lambda i: (i, 0)),       # packed rows
                pl.BlockSpec((VB_ROWS, VB_COLS), lambda i: (0, 0)),  # vec/bias slab
                pl.BlockSpec((W_ROWS, W_COLS), lambda i: (0, 0)),    # weight slab
            ],
            out_specs=pl.BlockSpec((tb, OUT_DIM), lambda i: (i, 0)),
        ),
        compiler_params=pltpu.CompilerParams(
            dimension_semantics=("parallel",)),   # megacore sharding on v7x
        cost_estimate=cost,
    )(rows, vb_slab, w_slab)

    return out[:, :INPUT_DIM], out[:, INPUT_DIM:OUT_DIM]


# ----------------------------------- main ---------------------------------------
if __name__ == "__main__":
    key = jax.random.PRNGKey(0)
    k_param, k_x, k_src, k_eps = jax.random.split(key, 4)

    raw = init_raw_params(k_param)
    packed = pack_params(raw)

    x = jax.random.normal(k_x, (BATCH, INPUT_DIM), jnp.float32)
    src = jax.random.randint(k_src, (BATCH,), 0, N_SOURCE, jnp.int32)
    eps = jax.random.normal(k_eps, (BATCH, EPS_DIM), jnp.float32)

    x_hat, z = mesnet_forward(x, src, eps, packed)
    jax.block_until_ready((x_hat, z))

    assert x_hat.shape == (BATCH, INPUT_DIM) and z.shape == (BATCH, LATENT_DIM)
    assert bool(jnp.all(jnp.isfinite(x_hat))) and bool(jnp.all(jnp.isfinite(z)))

    # sanity check against a pure-JAX reference (tolerance covers default-precision
    # MXU matmuls)
    x_hat_ref, z_ref = reference_forward(x, src, eps, raw)
    assert bool(jnp.allclose(x_hat, x_hat_ref, atol=5e-2, rtol=5e-2)), \
        float(jnp.max(jnp.abs(x_hat - x_hat_ref)))
    assert bool(jnp.allclose(z, z_ref, atol=5e-2, rtol=5e-2)), \
        float(jnp.max(jnp.abs(z - z_ref)))

    print("KERNEL_OK")
</pallas_src>

<mosaic_0001>
module attributes {stable_mosaic.version = 11 : i64} {
  func.func @mesnet_kernel(%arg0: i32, %arg1: memref<8x48xf32, #tpu.memory_space<vmem>>, %arg2: memref<17x32xf32, #tpu.memory_space<vmem>>, %arg3: memref<184x64xf32, #tpu.memory_space<vmem>>, %arg4: memref<8x24xf32, #tpu.memory_space<vmem>>) attributes {dimension_semantics = [#tpu.dimension_semantics<parallel>], iteration_bounds = array<i64: 1>, scalar_prefetch = 0 : i64, scratch_operands = 0 : i64, tpu.core_type = #tpu.core_type<tc>, window_params = [{transform_indices = @transform_0, window_bounds = array<i64: 8, 48>}, {pipeline_mode = #tpu.pipeline_mode<synchronous>, transform_indices = @transform_1, window_bounds = array<i64: 17, 32>}, {pipeline_mode = #tpu.pipeline_mode<synchronous>, transform_indices = @transform_2, window_bounds = array<i64: 184, 64>}, {transform_indices = @transform_3, window_bounds = array<i64: 8, 24>}]} {
    %c0 = arith.constant 0 : index
    %c0_0 = arith.constant 0 : index
    %0 = vector.load %arg1[%c0, %c0_0] : memref<8x48xf32, #tpu.memory_space<vmem>>, vector<8x48xf32>
    %1 = vector.extract_strided_slice %0 {offsets = [0, 0], sizes = [8, 16], strides = [1, 1]} : vector<8x48xf32> to vector<8x16xf32>
    %2 = vector.extract_strided_slice %0 {offsets = [0, 16], sizes = [8, 4], strides = [1, 1]} : vector<8x48xf32> to vector<8x4xf32>
    %3 = vector.extract_strided_slice %0 {offsets = [0, 20], sizes = [8, 16], strides = [1, 1]} : vector<8x48xf32> to vector<8x16xf32>
    %4 = vector.extract_strided_slice %0 {offsets = [0, 36], sizes = [8, 4], strides = [1, 1]} : vector<8x48xf32> to vector<8x4xf32>
    %5 = vector.extract_strided_slice %0 {offsets = [0, 40], sizes = [8, 8], strides = [1, 1]} : vector<8x48xf32> to vector<8x8xf32>
    %c0_1 = arith.constant 0 : index
    %c0_2 = arith.constant 0 : index
    %6 = vector.load %arg2[%c0_1, %c0_2] : memref<17x32xf32, #tpu.memory_space<vmem>>, vector<1x16xf32>
    %7 = vector.broadcast %6 : vector<1x16xf32> to vector<8x16xf32>
    %8 = arith.addf %1, %7 : vector<8x16xf32>
    %c1 = arith.constant 1 : index
    %c0_3 = arith.constant 0 : index
    %9 = vector.load %arg2[%c1, %c0_3] : memref<17x32xf32, #tpu.memory_space<vmem>>, vector<1x16xf32>
    %10 = vector.broadcast %9 : vector<1x16xf32> to vector<8x16xf32>
    %11 = arith.mulf %10, %3 : vector<8x16xf32>
    %12 = arith.addf %8, %11 : vector<8x16xf32>
    %c2 = arith.constant 2 : index
    %c0_4 = arith.constant 0 : index
    %13 = vector.load %arg2[%c2, %c0_4] : memref<17x32xf32, #tpu.memory_space<vmem>>, vector<1x16xf32>
    %14 = vector.broadcast %13 : vector<1x16xf32> to vector<8x16xf32>
    %15 = arith.mulf %12, %14 : vector<8x16xf32>
    %c152 = arith.constant 152 : index
    %c0_5 = arith.constant 0 : index
    %16 = vector.load %arg3[%c152, %c0_5] : memref<184x64xf32, #tpu.memory_space<vmem>>, vector<4x8xf32>
    %cst = arith.constant dense<0.000000e+00> : vector<8x8xf32>
    %17 = tpu.matmul %2, %16, %cst {dimension_numbers = #tpu.dot_dimension_numbers<[1], [0], [0], [1], [0, 0, 1, 1], [], []>} : vector<8x4xf32>, vector<4x8xf32>, vector<8x8xf32> -> vector<8x8xf32>
    %c8 = arith.constant 8 : index
    %c0_6 = arith.constant 0 : index
    %18 = vector.load %arg2[%c8, %c0_6] : memref<17x32xf32, #tpu.memory_space<vmem>>, vector<1x8xf32>
    %19 = vector.broadcast %18 : vector<1x8xf32> to vector<8x8xf32>
    %20 = arith.addf %17, %19 : vector<8x8xf32>
    %21 = vector.extract_strided_slice %20 {offsets = [0, 4], sizes = [8, 4], strides = [1, 1]} : vector<8x8xf32> to vector<8x4xf32>
    %cst_7 = arith.constant 5.000000e-01 : f32
    %22 = vector.broadcast %cst_7 : f32 to vector<8x4xf32>
    %23 = arith.mulf %22, %21 : vector<8x4xf32>
    %24 = math.exp %23 : vector<8x4xf32>
    %25 = vector.extract_strided_slice %20 {offsets = [0, 0], sizes = [8, 4], strides = [1, 1]} : vector<8x8xf32> to vector<8x4xf32>
    %26 = arith.addf %2, %25 : vector<8x4xf32>
    %27 = arith.mulf %24, %4 : vector<8x4xf32>
    %28 = arith.addf %26, %27 : vector<8x4xf32>
    %c160 = arith.constant 160 : index
    %c0_8 = arith.constant 0 : index
    %29 = vector.load %arg3[%c160, %c0_8] : memref<184x64xf32, #tpu.memory_space<vmem>>, vector<4x4xf32>
    %cst_9 = arith.constant dense<0.000000e+00> : vector<8x4xf32>
    %30 = tpu.matmul %28, %29, %cst_9 {dimension_numbers = #tpu.dot_dimension_numbers<[1], [0], [0], [1], [0, 0, 1, 1], [], []>} : vector<8x4xf32>, vector<4x4xf32>, vector<8x4xf32> -> vector<8x4xf32>
    %31 = arith.addf %28, %30 : vector<8x4xf32>
    %c9 = arith.constant 9 : index
    %c0_10 = arith.constant 0 : index
    %32 = vector.load %arg2[%c9, %c0_10] : memref<17x32xf32, #tpu.memory_space<vmem>>, vector<1x4xf32>
    %33 = vector.broadcast %32 : vector<1x4xf32> to vector<8x4xf32>
    %34 = arith.addf %31, %33 : vector<8x4xf32>
    %c6 = arith.constant 6 : index
    %c0_11 = arith.constant 0 : index
    %35 = vector.load %arg2[%c6, %c0_11] : memref<17x32xf32, #tpu.memory_space<vmem>>, vector<1x4xf32>
    %36 = vector.broadcast %35 : vector<1x4xf32> to vector<8x4xf32>
    %37 = arith.mulf %34, %36 : vector<8x4xf32>
    %c176 = arith.constant 176 : index
    %c0_12 = arith.constant 0 : index
    %38 = vector.load %arg3[%c176, %c0_12] : memref<184x64xf32, #tpu.memory_space<vmem>>, vector<4x64xf32>
    %cst_13 = arith.constant dense<0.000000e+00> : vector<8x64xf32>
    %39 = tpu.matmul %37, %38, %cst_13 {dimension_numbers = #tpu.dot_dimension_numbers<[1], [0], [0], [1], [0, 0, 1, 1], [], []>} : vector<8x4xf32>, vector<4x64xf32>, vector<8x64xf32> -> vector<8x64xf32>
    %c0_14 = arith.constant 0 : index
    %c0_15 = arith.constant 0 : index
    %40 = vector.load %arg3[%c0_14, %c0_15] : memref<184x64xf32, #tpu.memory_space<vmem>>, vector<16x32xf32>
    %cst_16 = arith.constant dense<0.000000e+00> : vector<8x32xf32>
    %41 = tpu.matmul %15, %40, %cst_16 {dimension_numbers = #tpu.dot_dimension_numbers<[1], [0], [0], [1], [0, 0, 1, 1], [], []>} : vector<8x16xf32>, vector<16x32xf32>, vector<8x32xf32> -> vector<8x32xf32>
    %42 = vector.extract_strided_slice %39 {offsets = [0, 0], sizes = [8, 32], strides = [1, 1]} : vector<8x64xf32> to vector<8x32xf32>
    %43 = arith.addf %41, %42 : vector<8x32xf32>
    %c11 = arith.constant 11 : index
    %c0_17 = arith.constant 0 : index
    %44 = vector.load %arg2[%c11, %c0_17] : memref<17x32xf32, #tpu.memory_space<vmem>>, vector<1x32xf32>
    %45 = vector.broadcast %44 : vector<1x32xf32> to vector<8x32xf32>
    %46 = arith.addf %43, %45 : vector<8x32xf32>
    %cst_18 = arith.constant 0.000000e+00 : f32
    %47 = vector.broadcast %cst_18 : f32 to vector<8x32xf32>
    %48 = arith.maximumf %46, %47 : vector<8x32xf32>
    %c16 = arith.constant 16 : index
    %c0_19 = arith.constant 0 : index
    %49 = vector.load %arg3[%c16, %c0_19] : memref<184x64xf32, #tpu.memory_space<vmem>>, vector<32x32xf32>
    %cst_20 = arith.constant dense<0.000000e+00> : vector<8x32xf32>
    %50 = tpu.matmul %48, %49, %cst_20 {dimension_numbers = #tpu.dot_dimension_numbers<[1], [0], [0], [1], [0, 0, 1, 1], [], []>} : vector<8x32xf32>, vector<32x32xf32>, vector<8x32xf32> -> vector<8x32xf32>
    %c12 = arith.constant 12 : index
    %c0_21 = arith.constant 0 : index
    %51 = vector.load %arg2[%c12, %c0_21] : memref<17x32xf32, #tpu.memory_space<vmem>>, vector<1x32xf32>
    %52 = vector.broadcast %51 : vector<1x32xf32> to vector<8x32xf32>
    %53 = arith.addf %50, %52 : vector<8x32xf32>
    %c88 = arith.constant 88 : index
    %c0_22 = arith.constant 0 : index
    %54 = vector.load %arg3[%c88, %c0_22] : memref<184x64xf32, #tpu.memory_space<vmem>>, vector<32x8xf32>
    %cst_23 = arith.constant dense<0.000000e+00> : vector<8x8xf32>
    %55 = tpu.matmul %53, %54, %cst_23 {dimension_numbers = #tpu.dot_dimension_numbers<[1], [0], [0], [1], [0, 0, 1, 1], [], []>} : vector<8x32xf32>, vector<32x8xf32>, vector<8x8xf32> -> vector<8x8xf32>
    %c13 = arith.constant 13 : index
    %c0_24 = arith.constant 0 : index
    %56 = vector.load %arg2[%c13, %c0_24] : memref<17x32xf32, #tpu.memory_space<vmem>>, vector<1x8xf32>
    %57 = vector.broadcast %56 : vector<1x8xf32> to vector<8x8xf32>
    %58 = arith.addf %55, %57 : vector<8x8xf32>
    %c3 = arith.constant 3 : index
    %c0_25 = arith.constant 0 : index
    %59 = vector.load %arg2[%c3, %c0_25] : memref<17x32xf32, #tpu.memory_space<vmem>>, vector<1x8xf32>
    %60 = vector.broadcast %59 : vector<1x8xf32> to vector<8x8xf32>
    %61 = arith.addf %58, %60 : vector<8x8xf32>
    %c4 = arith.constant 4 : index
    %c0_26 = arith.constant 0 : index
    %62 = vector.load %arg2[%c4, %c0_26] : memref<17x32xf32, #tpu.memory_space<vmem>>, vector<1x8xf32>
    %63 = vector.broadcast %62 : vector<1x8xf32> to vector<8x8xf32>
    %64 = arith.mulf %63, %5 : vector<8x8xf32>
    %65 = arith.addf %61, %64 : vector<8x8xf32>
    %c168 = arith.constant 168 : index
    %c0_27 = arith.constant 0 : index
    %66 = vector.load %arg3[%c168, %c0_27] : memref<184x64xf32, #tpu.memory_space<vmem>>, vector<8x8xf32>
    %cst_28 = arith.constant dense<0.000000e+00> : vector<8x8xf32>
    %67 = tpu.matmul %65, %66, %cst_28 {dimension_numbers = #tpu.dot_dimension_numbers<[1], [0], [0], [1], [0, 0, 1, 1], [], []>} : vector<8x8xf32>, vector<8x8xf32>, vector<8x8xf32> -> vector<8x8xf32>
    %68 = arith.addf %65, %67 : vector<8x8xf32>
    %c10 = arith.constant 10 : index
    %c0_29 = arith.constant 0 : index
    %69 = vector.load %arg2[%c10, %c0_29] : memref<17x32xf32, #tpu.memory_space<vmem>>, vector<1x8xf32>
    %70 = vector.broadcast %69 : vector<1x8xf32> to vector<8x8xf32>
    %71 = arith.addf %68, %70 : vector<8x8xf32>
    %c5 = arith.constant 5 : index
    %c0_30 = arith.constant 0 : index
    %72 = vector.load %arg2[%c5, %c0_30] : memref<17x32xf32, #tpu.memory_space<vmem>>, vector<1x8xf32>
    %73 = vector.broadcast %72 : vector<1x8xf32> to vector<8x8xf32>
    %74 = arith.mulf %71, %73 : vector<8x8xf32>
    %75 = arith.mulf %74, %74 : vector<8x8xf32>
    %cst_31 = arith.constant dense<0.000000e+00> : vector<8xf32>
    %76 = vector.multi_reduction <add>, %75, %cst_31 [1] : vector<8x8xf32> to vector<8xf32>
    %77 = vector.shape_cast %76 : vector<8xf32> to vector<8x1xf32>
    %78 = math.sqrt %77 : vector<8x1xf32>
    %79 = math.log1p %78 : vector<8x1xf32>
    %cst_32 = arith.constant 9.99999971E-10 : f32
    %80 = vector.broadcast %cst_32 : f32 to vector<8x1xf32>
    %81 = arith.addf %78, %80 : vector<8x1xf32>
    %82 = arith.divf %79, %81 : vector<8x1xf32>
    %83 = vector.broadcast %82 : vector<8x1xf32> to vector<8x8xf32>
    %84 = arith.mulf %74, %83 : vector<8x8xf32>
    %c48 = arith.constant 48 : index
    %c0_33 = arith.constant 0 : index
    %85 = vector.load %arg3[%c48, %c0_33] : memref<184x64xf32, #tpu.memory_space<vmem>>, vector<8x32xf32>
    %cst_34 = arith.constant dense<0.000000e+00> : vector<8x32xf32>
    %86 = tpu.matmul %84, %85, %cst_34 {dimension_numbers = #tpu.dot_dimension_numbers<[1], [0], [0], [1], [0, 0, 1, 1], [], []>} : vector<8x8xf32>, vector<8x32xf32>, vector<8x32xf32> -> vector<8x32xf32>
    %87 = vector.extract_strided_slice %39 {offsets = [0, 32], sizes = [8, 32], strides = [1, 1]} : vector<8x64xf32> to vector<8x32xf32>
    %88 = arith.addf %86, %87 : vector<8x32xf32>
    %c14 = arith.constant 14 : index
    %c0_35 = arith.constant 0 : index
    %89 = vector.load %arg2[%c14, %c0_35] : memref<17x32xf32, #tpu.memory_space<vmem>>, vector<1x32xf32>
    %90 = vector.broadcast %89 : vector<1x32xf32> to vector<8x32xf32>
    %91 = arith.addf %88, %90 : vector<8x32xf32>
    %cst_36 = arith.constant 0.000000e+00 : f32
    %92 = vector.broadcast %cst_36 : f32 to vector<8x32xf32>
    %93 = arith.maximumf %91, %92 : vector<8x32xf32>
    %c56 = arith.constant 56 : index
    %c0_37 = arith.constant 0 : index
    %94 = vector.load %arg3[%c56, %c0_37] : memref<184x64xf32, #tpu.memory_space<vmem>>, vector<32x32xf32>
    %cst_38 = arith.constant dense<0.000000e+00> : vector<8x32xf32>
    %95 = tpu.matmul %93, %94, %cst_38 {dimension_numbers = #tpu.dot_dimension_numbers<[1], [0], [0], [1], [0, 0, 1, 1], [], []>} : vector<8x32xf32>, vector<32x32xf32>, vector<8x32xf32> -> vector<8x32xf32>
    %c15 = arith.constant 15 : index
    %c0_39 = arith.constant 0 : index
    %96 = vector.load %arg2[%c15, %c0_39] : memref<17x32xf32, #tpu.memory_space<vmem>>, vector<1x32xf32>
    %97 = vector.broadcast %96 : vector<1x32xf32> to vector<8x32xf32>
    %98 = arith.addf %95, %97 : vector<8x32xf32>
    %c120 = arith.constant 120 : index
    %c0_40 = arith.constant 0 : index
    %99 = vector.load %arg3[%c120, %c0_40] : memref<184x64xf32, #tpu.memory_space<vmem>>, vector<32x16xf32>
    %cst_41 = arith.constant dense<0.000000e+00> : vector<8x16xf32>
    %100 = tpu.matmul %98, %99, %cst_41 {dimension_numbers = #tpu.dot_dimension_numbers<[1], [0], [0], [1], [0, 0, 1, 1], [], []>} : vector<8x32xf32>, vector<32x16xf32>, vector<8x16xf32> -> vector<8x16xf32>
    %c16_42 = arith.constant 16 : index
    %c0_43 = arith.constant 0 : index
    %101 = vector.load %arg2[%c16_42, %c0_43] : memref<17x32xf32, #tpu.memory_space<vmem>>, vector<1x16xf32>
    %102 = vector.broadcast %101 : vector<1x16xf32> to vector<8x16xf32>
    %103 = arith.addf %100, %102 : vector<8x16xf32>
    %c7 = arith.constant 7 : index
    %c0_44 = arith.constant 0 : index
    %104 = vector.load %arg2[%c7, %c0_44] : memref<17x32xf32, #tpu.memory_space<vmem>>, vector<1x16xf32>
    %105 = vector.broadcast %104 : vector<1x16xf32> to vector<8x16xf32>
    %106 = arith.mulf %103, %105 : vector<8x16xf32>
    %c0_45 = arith.constant 0 : index
    %c0_46 = arith.constant 0 : index
    %107 = vector.load %arg4[%c0_45, %c0_46] : memref<8x24xf32, #tpu.memory_space<vmem>>, vector<8x16xf32>
    tpu.vector_store %arg4[%c0_45, %c0_46], %106 {strides = array<i32>} : memref<8x24xf32, #tpu.memory_space<vmem>>, vector<8x16xf32>,
    %c0_47 = arith.constant 0 : index
    %c16_48 = arith.constant 16 : index
    %108 = vector.load %arg4[%c0_47, %c16_48] : memref<8x24xf32, #tpu.memory_space<vmem>>, vector<8x8xf32>
    tpu.vector_store %arg4[%c0_47, %c16_48], %84 {strides = array<i32>} : memref<8x24xf32, #tpu.memory_space<vmem>>, vector<8x8xf32>,
    return
  }
  func.func @transform_0(%arg0: i32) -> (i32, i32) {
    %c0_i32 = arith.constant 0 : i32
    %c0_i32_0 = arith.constant 0 : i32
    return %arg0, %c0_i32 : i32, i32
  }
  func.func @transform_1(%arg0: i32) -> (i32, i32) {
    %c0_i32 = arith.constant 0 : i32
    %c0_i32_0 = arith.constant 0 : i32
    %c0_i32_1 = arith.constant 0 : i32
    return %c0_i32, %c0_i32_0 : i32, i32
  }
  func.func @transform_2(%arg0: i32) -> (i32, i32) {
    %c0_i32 = arith.constant 0 : i32
    %c0_i32_0 = arith.constant 0 : i32
    %c0_i32_1 = arith.constant 0 : i32
    return %c0_i32, %c0_i32_0 : i32, i32
  }
  func.func @transform_3(%arg0: i32) -> (i32, i32) {
    %c0_i32 = arith.constant 0 : i32
    %c0_i32_0 = arith.constant 0 : i32
    return %arg0, %c0_i32 : i32, i32
  }
}

</mosaic_0001>

<bundles_post_ra>
// kernel: mesnet_forward.1
= control target key start
LH: loop header
LB: loop body
LE: loop exit
PB: predicated region body
PF: predicated region fallthrough
CT: control target
= control target key end

     0   :  { %vm49_vm0 = vcmask 1043456   ;;  %v1119_v1 = vmov 0.0   ;;  %vm1120_vm1 = vmmov 0   ;;  %s1121_s16 = smov 112   ;;  %vm46_vm2 = vcmask 31744   ;;  %s1123_s19 = smov 16   ;;  %s1352_s0 = inlined_call_operand.vmem [shape: f32[8,48], index: 0, kind: input, shape index: {}]   ;;  %s1353_s2 = inlined_call_operand.vmem [shape: f32[184,64], index: 2, kind: input, shape index: {}]   ;;  %s1354_s1 = inlined_call_operand.vmem [shape: f32[17,32], index: 1, kind: input, shape index: {}]   ;;  %s1355_s3 = inlined_call_operand.vmem [shape: f32[8,24], index: 3, kind: output, shape index: {}]  }
   0x1   :  { %v1150_v0 = vld [vmem:[%s1352_s0] sm:$0xff]  ;;  %1027 = vmatprep.subr.mxu0 %v1119_v1  ;;  %v38_v2 = vld [vmem:[%s1353_s2 + $0x98] sm:$0xf]  ;;  %1029 = vmatprep.mubr.msk.f32.mxu0 %vm1120_vm1, %v1119_v1  ;;  %s1122_s0 = smov 96   ;;  %v967_v4 = vld [vmem:[%s1354_s1 + $0x8] ss:$0 sm:$0xff] }
   0x2   :  { %44 = vrot.lane.b32.xlu0 %v1150_v0, %s1121_s16  ;;  %1028 = vmatpush3.msk.msra.mxu0 %vm49_vm0, %v38_v2  ;;  %v140_v10 = vld [vmem:[%s1353_s2 + $0xa0] sm:$0xf]  ;;  %s1124_s22 = smov 12   ;;  %v972_v19 = vld [vmem:[%s1354_s1 + $0x9] ss:$0 sm:$0xff]  ;;  %s1125_s25 = smov 108  }
   0x3   :  { %1032 = vmatprep.subr.mxu1 %v1119_v1  ;;  %1034 = vmatprep.mubr.msk.f32.mxu1 %vm1120_vm1, %v1119_v1  ;;  %v964_v21 = vld [vmem:[%s1354_s1] ss:$0 sm:$0xff]  ;;  %v965_v22 = vld [vmem:[%s1354_s1 + $0x1] ss:$0 sm:$0xff]  ;;  %v324_v26 = vld [vmem:[%s1353_s2 + $0x8] sm:$0xff]  ;;  %vm325_vm3 = vcmask 130048  }
   0x4   :  { %1037 = vmatprep.subr.mxu0 %v1119_v1  ;;  %1033 = vmatpush3.msk.msra.mxu1 %vm49_vm0, %v140_v10  ;;  %v20_v24 = vadd.f32 %v964_v21, %v1150_v0  ;;  %v244_v27 = vld [vmem:[%s1353_s2 + $0xb0] sm:$0xf]  ;;  %v323_v28 = vld [vmem:[%s1353_s2] sm:$0xff]  ;;  %s1126_s13 = smov 88   ;;  %v409_v43 = vld [vmem:[%s1353_s2 + $0x28] sm:$0xff]  ;;  %vm415_vm4 = vcmask 261120  }
   0x5   :  { %1042 = vmatprep.subr.mxu1 %v1119_v1  ;;  %v966_v29 = vld [vmem:[%s1354_s1 + $0x2] ss:$0 sm:$0xff]  ;;  %v973_v34 = vld [vmem:[%s1354_s1 + $0x6] ss:$0 sm:$0xff]  ;;  %v407_v45 = vld [vmem:[%s1353_s2 + $0x18] sm:$0xff]  ;;  %vm588_vm5 = vcmask 64512  }
   0x6   :  { %131 = vrot.lane.b32.xlu0 %v1150_v0, %s1122_s0  ;;  %v408_v44 = vld [vmem:[%s1353_s2 + $0x20] sm:$0xff]  ;;  %v406_v46 = vld [vmem:[%s1353_s2 + $0x10] sm:$0xff]  ;;  %v491_v48 = vld [vmem:[%s1353_s2 + $0x68] sm:$0xff]  ;;  %vm958_vm9 = vcmask 195712  }
   0x7   :  { %v492_v47 = vld [vmem:[%s1353_s2 + $0x70] sm:$0xff]  ;;  %v977_v50 = vld [vmem:[%s1354_s1 + $0xb] ss:$0 sm:$0xff]  ;;  %v490_v55 = vld [vmem:[%s1353_s2 + $0x60] sm:$0xff] }
   0x8   :  { %v489_v56 = vld [vmem:[%s1353_s2 + $0x58] sm:$0xff]  ;;  %v978_v57 = vld [vmem:[%s1354_s1 + $0xc] ss:$0 sm:$0xff]  ;;  %v983_v62 = vld [vmem:[%s1354_s1 + $0x4] ss:$0 sm:$0xff] }
   0x9   :  { %v587_v61 = vld [vmem:[%s1353_s2 + $0xa8] sm:$0xff] }
   0xa   :  { %v980_v63 = vld [vmem:[%s1354_s1 + $0xd] ss:$0 sm:$0xff]  ;;  %v985_v10 = vld [vmem:[%s1354_s1 + $0xa] ss:$0 sm:$0xff] }
  0x74   :  { %v45_v3 = vpop.permute.xlu0 %44 }
  0x75   :  { %1030 = vmatmul.mubr.msk.f32.vlgmr.msra.gmra.mxu0 %vm46_vm2, %v45_v3  ;;  %v982_v3 = vld [vmem:[%s1354_s1 + $0x3] ss:$0 sm:$0xff] }
  0x76   :  { %1039 = vmatprep.mubr.msk.f32.mxu0 %vm1120_vm1, %v1119_v1  ;;  %1038 = vmatpush3.msk.msra.mxu0 %vm49_vm0, %v244_v27 }
  0x77   :  { %1049 = vmatprep.subr.mxu0 %v1119_v1 }
  0x78   :  { %v132_v11 = vpop.permute.xlu0 %131 }
 0x135   :  { %v119_v5 = vpop.f32.mrf.mxu0 }
 0x136   :  { %v120_v6 = vadd.f32 %v967_v4, %v119_v5 }
 0x137   :  { %v1031_v7 = vpop.f32.mrf.mxu0 }
 0x138   :  { %v123_v8 = vmul.f32 0.5, %v120_v6  ;;  %127 = vrot.lane.b32.xlu1 %v120_v6, %s1123_s19 }
 0x13a   :  { %v124_v9 = vmul.f32 1.442695, %v123_v8 }
 0x13c   :  { %1111 = vpow2.f32 %v124_v9 }
 0x149   :  { %v1112_v12 = vpop.eup %1111 }
 0x14a   :  { %v134_v13 = vmul.f32 %v1112_v12, %v132_v11 }
 0x14c   :  { %136 = vrot.lane.b32.xlu1 %v134_v13, %s1124_s22  ;;  %v986_v13 = vld [vmem:[%s1354_s1 + $0x5] ss:$0 sm:$0xff] }
 0x1aa   :  { %v128_v14 = vpop.permute.xlu1 %127 }
 0x1ab   :  { %v130_v15 = vadd.f32 %v128_v14, %v1150_v0 }
 0x1be   :  { %v137_v16 = vpop.permute.xlu1 %136 }
 0x1bf   :  { %v139_v17 = vadd.f32 %v137_v16, %v130_v15 }
 0x1c1   :  { %142 = vrot.lane.b32.xlu0 %v139_v17, %s1121_s16 }
 0x1c5   :  { %230 = vrot.lane.b32.xlu0 %v972_v19, %s1123_s19 }
 0x1c9   :  { %27 = vrot.lane.b32.xlu0 %v1150_v0, %s1125_s25 }
 0x1cd   :  { %582 = vrot.lane.b32.xlu0 %v1150_v0, %s1126_s13 }
 0x233   :  { %v143_v18 = vpop.permute.xlu0 %142 }
 0x234   :  { %1035 = vmatmul.mubr.msk.f32.vlgmr.msra.gmra.mxu1 %vm46_vm2, %v143_v18  ;;  %v699_v18 = vld [vmem:[%s1353_s2 + $0x30] sm:$0xff] }
 0x235   :  { %1046 = vmatprep.mubr.msk.f32.mxu1 %vm1120_vm1, %v1119_v1  ;;  %1043 = vmatpush3.msra.mxu1 %v324_v26 }
 0x236   :  { %1044 = vmatprep.subr.mxu1 %v1119_v1 }
 0x237   :  { %v231_v20 = vpop.permute.xlu0 %230  ;;  %1045 = vmatpush3.msra.mxu1 %v323_v28 }
 0x238   :  { %1060 = vmatprep.subr.mxu1 %v1119_v1 }
 0x23b   :  { %v28_v23 = vpop.permute.xlu0 %27 }
 0x23c   :  { %v30_v25 = vmul.f32 %v965_v22, %v28_v23 }
 0x23e   :  { %v31_v30 = vadd.f32 %v30_v25, %v20_v24 }
 0x23f   :  { %v583_v0 = vpop.permute.xlu0 %582 }
 0x240   :  { %v37_v31 = vmul.f32 %v966_v29, %v31_v30  ;;  %v585_v4 = vmul.f32 %v983_v62, %v583_v0 }
 0x242   :  { %1047 = vmatmul.mubr.msk.f32.vlgmr.msra.gmra.mxu1 %vm325_vm3, %v37_v31 }
 0x243   :  { %1068 = vmatprep.mubr.msk.f32.mxu1 %vm1120_vm1, %v1119_v1  ;;  %1061 = vmatpush3.msra.mxu1 %v492_v47 }
 0x244   :  { %1062 = vmatprep.subr.mxu1 %v1119_v1 }
 0x245   :  { %1063 = vmatpush3.msra.mxu1 %v491_v48 }
 0x246   :  { %1064 = vmatprep.subr.mxu1 %v1119_v1 }
 0x247   :  { %1065 = vmatpush3.msra.mxu1 %v490_v55 }
 0x248   :  { %1066 = vmatprep.subr.mxu1 %v1119_v1 }
 0x249   :  { %1067 = vmatpush3.msra.mxu1 %v489_v56  ;;  %v991_v56 = vld [vmem:[%s1354_s1 + $0x10] ss:$0 sm:$0xff] }
 0x24a   :  { %1076 = vmatprep.subr.mxu1 %v1119_v1 }
 0x2f4   :  { %v215_v32 = vpop.f32.mrf.mxu1 }
 0x2f5   :  { %220 = vrot.lane.b32.xlu1 %v215_v32, %s1123_s19 }
 0x2f6   :  { %v1036_v33 = vpop.f32.mrf.mxu1 }
 0x2f9   :  { %240 = vrot.lane.b32.xlu1 %v973_v34, %s1123_s19 }
 0x302   :  { %v395_v40 = vpop.f32.mrf.mxu1 }
 0x304   :  { %v1048_v41 = vpop.f32.mrf.mxu1 }
 0x305   :  { %v869_v41 = vld [vmem:[%s1353_s2 + $0x90] sm:$0xff] }
 0x367   :  { %v221_v35 = vpop.permute.xlu1 %220 }
 0x368   :  { %v223_v36 = vadd.f32 %v221_v35, %v139_v17 }
 0x36a   :  { %v233_v37 = vadd.f32 %v231_v20, %v223_v36 }
 0x36b   :  { %v241_v38 = vpop.permute.xlu1 %240 }
 0x36c   :  { %v243_v39 = vmul.f32 %v241_v38, %v233_v37  ;;  %v787_v37 = vld [vmem:[%s1353_s2 + $0x50] sm:$0xff]  ;;  %v786_v38 = vld [vmem:[%s1353_s2 + $0x48] sm:$0xff] }
 0x36e   :  { %246 = vrot.lane.b32.xlu1 %v243_v39, %s1121_s16  ;;  %v785_v39 = vld [vmem:[%s1353_s2 + $0x40] sm:$0xff] }
 0x3e0   :  { %v247_v42 = vpop.permute.xlu1 %246 }
 0x3e1   :  { %1040 = vmatmul.mubr.msk.f32.vlgmr.msra.gmra.mxu0 %vm46_vm2, %v247_v42  ;;  %v868_v42 = vld [vmem:[%s1353_s2 + $0x88] sm:$0xff] }
 0x3e2   :  { %1057 = vmatprep.mubr.msk.f32.mxu0 %vm1120_vm1, %v1119_v1  ;;  %1050 = vmatpush3.msra.mxu0 %v409_v43 }
 0x3e3   :  { %1051 = vmatprep.subr.mxu0 %v1119_v1 }
 0x3e4   :  { %1052 = vmatpush3.msra.mxu0 %v408_v44 }
 0x3e5   :  { %1053 = vmatprep.subr.mxu0 %v1119_v1 }
 0x3e6   :  { %1054 = vmatpush3.msra.mxu0 %v407_v45  ;;  %v988_v45 = vld [vmem:[%s1354_s1 + $0xe] ss:$0 sm:$0xff] }
 0x3e7   :  { %1055 = vmatprep.subr.mxu0 %v1119_v1 }
 0x3e8   :  { %1056 = vmatpush3.msra.mxu0 %v406_v46 }
 0x3e9   :  { %1071 = vmatprep.subr.mxu0 %v1119_v1 }
 0x4a1   :  { %v319_v49 = vpop.f32.mrf.mxu0 }
 0x4a2   :  { %v396_v51 = vadd.f32 %v395_v40, %v319_v49  ;;  %701 = vrot.lane.b32.xlu0 %v319_v49, %s1122_s0  ;;  %v784_v40 = vld [vmem:[%s1353_s2 + $0x38] sm:$0xff] }
 0x4a3   :  { %v1041_v52 = vpop.f32.mrf.mxu0 }
 0x4a4   :  { %v404_v53 = vadd.f32 %v977_v50, %v396_v51  ;;  %v867_v50 = vld [vmem:[%s1353_s2 + $0x80] sm:$0xff]  ;;  %v866_v51 = vld [vmem:[%s1353_s2 + $0x78] sm:$0xff]  ;;  %v989_v52 = vld [vmem:[%s1354_s1 + $0xf] ss:$0 sm:$0xff] }
 0x4a6   :  { %v405_v54 = vmax.f32 %v404_v53, 0.0 }
 0x4a8   :  { %1058 = vmatmul.mubr.msk.f32.vlgmr.msra.gmra.mxu0 %vm415_vm4, %v405_v54 }
 0x4a9   :  { %1073 = vmatprep.mubr.msk.f32.mxu0 %vm1120_vm1, %v1119_v1  ;;  %1072 = vmatpush3.msra.mxu0 %v587_v61 }
 0x4aa   :  { %1081 = vmatprep.subr.mxu0 %v1119_v1 }
 0x514   :  { %v702_v43 = vpop.permute.xlu0 %701 }
 0x568   :  { %v485_v58 = vpop.f32.mrf.mxu0 }
 0x569   :  { %v486_v59 = vadd.f32 %v978_v57, %v485_v58 }
 0x56a   :  { %v1059_v60 = vpop.f32.mrf.mxu0 }
 0x56b   :  { %1069 = vmatmul.mubr.msk.f32.vlgmr.msra.gmra.mxu1 %vm415_vm4, %v486_v59 }
 0x56c   :  { %1078 = vmatprep.mubr.msk.f32.mxu1 %vm1120_vm1, %v1119_v1  ;;  %1077 = vmatpush3.msra.mxu1 %v699_v18 }
 0x56d   :  { %1092 = vmatprep.subr.mxu1 %v1119_v1 }
 0x62b   :  { %v567_v2 = vpop.f32.mrf.mxu1 }
 0x62c   :  { %v568_v5 = vadd.f32 %v980_v63, %v567_v2 }
 0x62d   :  { %v1070_v6 = vpop.f32.mrf.mxu1 }
 0x62e   :  { %v576_v7 = vadd.f32 %v982_v3, %v568_v5 }
 0x630   :  { %v586_v8 = vadd.f32 %v585_v4, %v576_v7 }
 0x632   :  { %1074 = vmatmul.mubr.msk.f32.vlgmr.msra.gmra.mxu0 %vm588_vm5, %v586_v8 }
 0x633   :  { %1089 = vmatprep.mubr.msk.f32.mxu0 %vm1120_vm1, %v1119_v1  ;;  %1082 = vmatpush3.msra.mxu0 %v787_v37 }
 0x634   :  { %1083 = vmatprep.subr.mxu0 %v1119_v1 }
 0x635   :  { %1084 = vmatpush3.msra.mxu0 %v786_v38 }
 0x636   :  { %1085 = vmatprep.subr.mxu0 %v1119_v1 }
 0x637   :  { %1086 = vmatpush3.msra.mxu0 %v785_v39 }
 0x638   :  { %1087 = vmatprep.subr.mxu0 %v1119_v1 }
 0x639   :  { %1088 = vmatpush3.msra.mxu0 %v784_v40 }
 0x6f2   :  { %v658_v9 = vpop.f32.mrf.mxu0 }
 0x6f3   :  { %v662_v11 = vadd.f32 %v658_v9, %v586_v8 }
 0x6f4   :  { %v1075_v12 = vpop.f32.mrf.mxu0 }
 0x6f5   :  { %v668_v14 = vadd.f32 %v985_v10, %v662_v11 }
 0x6f7   :  { %v674_v15 = vmul.f32 %v986_v13, %v668_v14 }
 0x6f9   :  { %v675_v16 = vmul.f32 %v674_v15, %v674_v15 }
 0x6fb   :  { %v676_v17 = vsel %vm588_vm5, %v675_v16, 0.0 }
 0x6fc   :  { %677 = vadd.xlane.f32.xlu1 %v676_v17 }
 0x785   :  { %v678_v19 = vpop.xlane.xlu1 %677 }
 0x786   :  { %1113 = vrsqrt.f32 %v678_v19  ;;  %vm681_vm6 = vcmp.eq.f32.partialorder %v678_v19, inf  ;;  %v684_v22 = vand.u32 2147483648, %v678_v19  ;;  %vm683_vm7 = vcmp.eq.f32.partialorder %v678_v19, 0.0 }
 0x793   :  { %v1114_v20 = vpop.eup %1113 }
 0x794   :  { %v680_v21 = vmul.f32 %v1114_v20, %v678_v19 }
 0x796   :  { %v682_v23 = vsel %vm681_vm6, %v678_v19, %v680_v21 }
 0x797   :  { %v685_v24 = vsel %vm683_vm7, %v684_v22, %v682_v23 }
 0x798   :  { %v686_v25 = vadd.f32 1.0, %v685_v24  ;;  %v695_v26 = vadd.f32 1e-09, %v685_v24  ;;  %v689_v27 = vmul.f32 -0.5, %v685_v24  ;;  %v692_v29 = vand.u32 2147483647, %v685_v24 }
 0x79a   :  { %1115 = vlog2.f32 %v686_v25  ;;  %v690_v28 = vadd.f32 1.0, %v689_v27  ;;  %vm693_vm8 = vcmp.lt.f32.partialorder %v692_v29, 0.0004427343 }
 0x79b   :  { %1117 = vrcp.f32 %v695_v26 }
 0x79c   :  { %v691_v32 = vmul.f32 %v690_v28, %v685_v24 }
 0x7a7   :  { %v1116_v30 = vpop.eup %1115 }
 0x7a8   :  { %v688_v31 = vmul.f32 0.6931472, %v1116_v30  ;;  %v1118_v33 = vpop.eup %1117 }
 0x7aa   :  { %v694_v34 = vsel %vm693_vm8, %v691_v32, %v688_v31 }
 0x7ab   :  { %v697_v35 = vmul.f32 %v1118_v33, %v694_v34 }
 0x7ad   :  { %v698_v36 = vmul.f32 %v697_v35, %v674_v15 }
 0x7af   :  { %955 = vrot.lane.b32.xlu0 %v698_v36, %s1123_s19  ;;  %1079 = vmatmul.mubr.msk.f32.vlgmr.msra.gmra.mxu1 %vm588_vm5, %v698_v36 }
 0x7b0   :  { %1100 = vmatprep.mubr.msk.f32.mxu1 %vm1120_vm1, %v1119_v1  ;;  %1093 = vmatpush3.msra.mxu1 %v869_v41 }
 0x7b1   :  { %1094 = vmatprep.subr.mxu1 %v1119_v1 }
 0x7b2   :  { %1095 = vmatpush3.msra.mxu1 %v868_v42 }
 0x7b3   :  { %1096 = vmatprep.subr.mxu1 %v1119_v1 }
 0x7b4   :  { %1097 = vmatpush3.msra.mxu1 %v867_v50 }
 0x7b5   :  { %1098 = vmatprep.subr.mxu1 %v1119_v1  ;;  %v993_v1 = vld [vmem:[%s1354_s1 + $0x7] ss:$0 sm:$0xff] }
 0x7b6   :  { %1099 = vmatpush3.msra.mxu1 %v866_v51 }
 0x821   :  { %v956_v61 = vpop.permute.xlu0 %955 }
 0x86f   :  { %v773_v44 = vpop.f32.mrf.mxu1 }
 0x870   :  { %v774_v46 = vadd.f32 %v773_v44, %v702_v43 }
 0x871   :  { %v1080_v47 = vpop.f32.mrf.mxu1 }
 0x872   :  { %v782_v48 = vadd.f32 %v988_v45, %v774_v46 }
 0x874   :  { %v783_v49 = vmax.f32 %v782_v48, 0.0 }
 0x876   :  { %1090 = vmatmul.mubr.msk.f32.vlgmr.msra.gmra.mxu0 %vm415_vm4, %v783_v49 }
 0x936   :  { %v862_v53 = vpop.f32.mrf.mxu0 }
 0x937   :  { %v863_v54 = vadd.f32 %v989_v52, %v862_v53 }
 0x938   :  { %v1091_v55 = vpop.f32.mrf.mxu0 }
 0x939   :  { %1101 = vmatmul.mubr.msk.f32.vlgmr.msra.gmra.mxu1 %vm415_vm4, %v863_v54 }
 0x9f9   :  { %v944_v57 = vpop.f32.mrf.mxu1 }
 0x9fa   :  { %v945_v58 = vadd.f32 %v991_v56, %v944_v57 }
 0x9fb   :  { %v1102_v59 = vpop.f32.mrf.mxu1 }
 0x9fc   :  { %v953_v60 = vmul.f32 %v993_v1, %v945_v58 }
 0x9fe   :  { %954 = vst.msk [vmem:[%s1355_s3] sm:$0xff] %vm325_vm3, %v953_v60 }
 0x9ff   :  { %959 = vst.msk [vmem:[%s1355_s3] sm:$0xff] %vm958_vm9, %v956_v61 }

</bundles_post_ra>
